<compile_context>
chip_gen: v7x
topology: tpu7x:2x2x1
jax: 0.10.0
libtpu: 0.0.40
codegen_flags: <defaults>
</compile_context>

<pallas_src>
import functools
import math

import jax
import jax.numpy as jnp
from jax import lax
from jax.experimental import pallas as pl
from jax.experimental.pallas import tpu as pltpu


def _flash_attn_kernel(q_ref, kv_ref, o_ref, m_sc, l_sc, acc_sc, *, scale):
    # q_ref:  (tq, D)  query tile   (batch dim squeezed)
    # kv_ref: (tk, D)  key/value tile (q == k == v == x for this module)
    # o_ref:  (tq, D)  output tile
    # m_sc:   (tq, 1) f32   running row max
    # l_sc:   (tq, 1) f32   running row sum of exp
    # acc_sc: (tq, D) f32   running (unnormalized) PV accumulator
    kv_idx = pl.program_id(2)

    @pl.when(kv_idx == 0)
    def _init():
        m_sc[...] = jnp.full_like(m_sc, -jnp.inf)
        l_sc[...] = jnp.zeros_like(l_sc)
        acc_sc[...] = jnp.zeros_like(acc_sc)

    # Fold the softmax scale into Q (O(tq*D) elementwise work, native dtype so
    # the MXU sees bf16 operands when the input is bf16).
    q = q_ref[...] * jnp.asarray(scale, dtype=q_ref.dtype)   # (tq, D)
    kv = kv_ref[...]                                         # (tk, D)

    # scores = q @ k^T: contract the D axis of both operands — no physical
    # transpose of the K tile, f32 MXU accumulation.
    s = lax.dot_general(
        q, kv, (((1,), (1,)), ((), ())),
        preferred_element_type=jnp.float32)                  # (tq, tk) f32

    # Online (streaming) softmax update, all elementwise math in f32.
    m_prev = m_sc[...]
    m_new = jnp.maximum(m_prev, jnp.max(s, axis=-1, keepdims=True))
    alpha = jnp.exp(m_prev - m_new)                          # rescale factor
    p = jnp.exp(s - m_new)                                   # (tq, tk) f32

    l_sc[...] = alpha * l_sc[...] + jnp.sum(p, axis=-1, keepdims=True)

    # PV matmul with probabilities cast back to the input dtype (bf16 rate on
    # the MXU for bf16 inputs), f32 accumulation.
    pv = lax.dot_general(
        p.astype(kv_ref.dtype), kv, (((1,), (0,)), ((), ())),
        preferred_element_type=jnp.float32)                  # (tq, D) f32
    acc_sc[...] = alpha * acc_sc[...] + pv
    m_sc[...] = m_new

    @pl.when(kv_idx == pl.num_programs(2) - 1)
    def _finalize():
        # Normalize once after the reduction: O(tq*D), reciprocal on the EUP.
        inv_l = pl.reciprocal(l_sc[...], approx=True)
        o_ref[...] = (acc_sc[...] * inv_l).astype(o_ref.dtype)


def self_attention(x, scale=None, *, block_q=256, block_kv=256):
    """Flash-style Pallas TPU self-attention.  x: (B, S, D)."""
    B, S, D = x.shape
    if scale is None:
        scale = 1.0 / math.sqrt(D)   # PyTorch scaled_dot_product_attention default

    # Tile sizes: use the requested block if it divides S, otherwise fall back
    # to the full sequence (still valid: full-extent dims satisfy the (8,128)
    # BlockSpec rule, and small-S problems fit trivially in VMEM).
    tq = block_q if S % block_q == 0 else S
    tk = block_kv if S % block_kv == 0 else S

    kernel = functools.partial(_flash_attn_kernel, scale=float(scale))

    # Explicit scoped-VMEM budget: double-buffered Q/KV/out tiles + f32
    # accumulators, with generous headroom, capped below v7x's 64 MiB VMEM.
    itemsize = jnp.dtype(x.dtype).itemsize
    est = (2 * tq * D + 2 * tk * D + 2 * tq * D) * itemsize   # pipelined tiles
    est += (tq * D + 2 * tq * 128) * 4                        # f32 scratch (padded)
    vmem_limit = int(min(max(4 * est, 32 * 1024 * 1024), 48 * 1024 * 1024))

    grid = (B, S // tq, S // tk)

    q_spec = pl.BlockSpec((pl.Squeezed(), tq, D), lambda b, qi, ki: (b, qi, 0))
    kv_spec = pl.BlockSpec((pl.Squeezed(), tk, D), lambda b, qi, ki: (b, ki, 0))
    o_spec = pl.BlockSpec((pl.Squeezed(), tq, D), lambda b, qi, ki: (b, qi, 0))

    return pl.pallas_call(
        kernel,
        out_shape=jax.ShapeDtypeStruct((B, S, D), x.dtype),
        grid_spec=pltpu.PrefetchScalarGridSpec(
            num_scalar_prefetch=0,
            grid=grid,
            # x is passed twice: once as the resident Q tile, once as the
            # pipelined K/V stream (q = k = v = x for this module).
            in_specs=[q_spec, kv_spec],
            out_specs=o_spec,
            scratch_shapes=[
                pltpu.VMEM((tq, 1), jnp.float32),    # m  (running max)
                pltpu.VMEM((tq, 1), jnp.float32),    # l  (running sum)
                pltpu.VMEM((tq, D), jnp.float32),    # acc (unnormalized PV)
            ],
        ),
        compiler_params=pltpu.CompilerParams(
            dimension_semantics=("parallel", "parallel", "arbitrary"),
            vmem_limit_bytes=vmem_limit,
        ),
    )(x, x)


def _reference(x, scale=None):
    B, S, D = x.shape
    if scale is None:
        scale = 1.0 / math.sqrt(D)
    xf = x.astype(jnp.float32)
    scores = jnp.einsum("bqd,bkd->bqk", xf, xf) * scale
    p = jax.nn.softmax(scores, axis=-1)
    return jnp.einsum("bqk,bkd->bqd", p, xf)


if __name__ == "__main__":
    key = jax.random.PRNGKey(0)

    # Small shape consistent with the module: (batch=2, seq=8, embed=32), f32.
    B, S, D = 2, 8, 32
    x = jax.random.normal(key, (B, S, D), dtype=jnp.float32)

    out = self_attention(x)
    jax.block_until_ready(out)

    ref = _reference(x)
    # Tolerance accounts for the approximate (EUP) reciprocal in the softmax
    # normalization; algorithmic errors would be O(1).
    assert jnp.allclose(out.astype(jnp.float32), ref, atol=1e-2, rtol=1e-2), \
        "mismatch vs reference (f32 case)"

    # Exercise the tiled / multi-block path with bf16 MXU operands:
    # grid = (1, 2, 2) with 256-wide q/kv tiles.
    B2, S2, D2 = 1, 512, 128
    x2 = jax.random.normal(jax.random.PRNGKey(1), (B2, S2, D2),
                           dtype=jnp.bfloat16)
    out2 = self_attention(x2)
    jax.block_until_ready(out2)
    ref2 = _reference(x2)
    assert jnp.allclose(out2.astype(jnp.float32), ref2, atol=5e-2, rtol=5e-2), \
        "mismatch vs reference (tiled bf16 case)"

    print("KERNEL_OK")
</pallas_src>

<mosaic_0001>
module attributes {stable_mosaic.version = 11 : i64} {
  func.func @_flash_attn_kernel(%arg0: i32, %arg1: i32, %arg2: i32, %arg3: memref<1x8x32xf32, #tpu.memory_space<vmem>>, %arg4: memref<1x8x32xf32, #tpu.memory_space<vmem>>, %arg5: memref<1x8x32xf32, #tpu.memory_space<vmem>>, %arg6: memref<8x1xf32, #tpu.memory_space<vmem>>, %arg7: memref<8x1xf32, #tpu.memory_space<vmem>>, %arg8: memref<8x32xf32, #tpu.memory_space<vmem>>) attributes {dimension_semantics = [#tpu.dimension_semantics<parallel>, #tpu.dimension_semantics<parallel>, #tpu.dimension_semantics<arbitrary>], iteration_bounds = array<i64: 2, 1, 1>, scalar_prefetch = 0 : i64, scratch_operands = 3 : i64, tpu.core_type = #tpu.core_type<tc>, window_params = [{transform_indices = @transform_0, window_bounds = array<i64: 1, 8, 32>}, {transform_indices = @transform_1, window_bounds = array<i64: 1, 8, 32>}, {transform_indices = @transform_2, window_bounds = array<i64: 1, 8, 32>}]} {
    %c0_i32 = arith.constant 0 : i32
    %0 = arith.cmpi eq, %arg2, %c0_i32 : i32
    %1 = arith.extui %0 : i1 to i32
    %c0_i32_0 = arith.constant 0 : i32
    %2 = arith.cmpi ne, %1, %c0_i32_0 : i32
    scf.if %2 {
      %cst_24 = arith.constant 0xFF800000 : f32
      %35 = vector.broadcast %cst_24 : f32 to vector<8x1xf32>
      %c0_25 = arith.constant 0 : index
      %c0_26 = arith.constant 0 : index
      %36 = vector.load %arg6[%c0_25, %c0_26] : memref<8x1xf32, #tpu.memory_space<vmem>>, vector<8x1xf32>
      tpu.vector_store %arg6[%c0_25, %c0_26], %35 {strides = array<i32>} : memref<8x1xf32, #tpu.memory_space<vmem>>, vector<8x1xf32>,
      %cst_27 = arith.constant 0.000000e+00 : f32
      %37 = vector.broadcast %cst_27 : f32 to vector<8x1xf32>
      %c0_28 = arith.constant 0 : index
      %c0_29 = arith.constant 0 : index
      %38 = vector.load %arg7[%c0_28, %c0_29] : memref<8x1xf32, #tpu.memory_space<vmem>>, vector<8x1xf32>
      tpu.vector_store %arg7[%c0_28, %c0_29], %37 {strides = array<i32>} : memref<8x1xf32, #tpu.memory_space<vmem>>, vector<8x1xf32>,
      %cst_30 = arith.constant 0.000000e+00 : f32
      %39 = vector.broadcast %cst_30 : f32 to vector<8x32xf32>
      %c0_31 = arith.constant 0 : index
      %c0_32 = arith.constant 0 : index
      %40 = vector.load %arg8[%c0_31, %c0_32] : memref<8x32xf32, #tpu.memory_space<vmem>>, vector<8x32xf32>
      tpu.vector_store %arg8[%c0_31, %c0_32], %39 {strides = array<i32>} : memref<8x32xf32, #tpu.memory_space<vmem>>, vector<8x32xf32>,
    } else {
    }
    %c0 = arith.constant 0 : index
    %c0_1 = arith.constant 0 : index
    %c0_2 = arith.constant 0 : index
    %3 = vector.load %arg3[%c0, %c0_1, %c0_2] : memref<1x8x32xf32, #tpu.memory_space<vmem>>, vector<1x8x32xf32>
    %4 = vector.shape_cast %3 : vector<1x8x32xf32> to vector<8x32xf32>
    %cst = arith.constant 0.176776692 : f32
    %5 = vector.broadcast %cst : f32 to vector<8x32xf32>
    %6 = arith.mulf %4, %5 : vector<8x32xf32>
    %c0_3 = arith.constant 0 : index
    %c0_4 = arith.constant 0 : index
    %c0_5 = arith.constant 0 : index
    %7 = vector.load %arg4[%c0_3, %c0_4, %c0_5] : memref<1x8x32xf32, #tpu.memory_space<vmem>>, vector<1x8x32xf32>
    %8 = vector.shape_cast %7 : vector<1x8x32xf32> to vector<8x32xf32>
    %cst_6 = arith.constant dense<0.000000e+00> : vector<8x8xf32>
    %9 = tpu.matmul %6, %8, %cst_6 {dimension_numbers = #tpu.dot_dimension_numbers<[1], [1], [0], [0], [0, 0, 1, 0], [], []>} : vector<8x32xf32>, vector<8x32xf32>, vector<8x8xf32> -> vector<8x8xf32>
    %c0_7 = arith.constant 0 : index
    %c0_8 = arith.constant 0 : index
    %10 = vector.load %arg6[%c0_7, %c0_8] : memref<8x1xf32, #tpu.memory_space<vmem>>, vector<8x1xf32>
    %cst_9 = arith.constant dense<0xFF800000> : vector<8xf32>
    %11 = vector.multi_reduction <maximumf>, %9, %cst_9 [1] : vector<8x8xf32> to vector<8xf32>
    %12 = vector.shape_cast %11 : vector<8xf32> to vector<8x1xf32>
    %13 = arith.maximumf %10, %12 : vector<8x1xf32>
    %14 = arith.subf %10, %13 : vector<8x1xf32>
    %15 = math.exp %14 : vector<8x1xf32>
    %16 = vector.broadcast %13 : vector<8x1xf32> to vector<8x8xf32>
    %17 = arith.subf %9, %16 : vector<8x8xf32>
    %18 = math.exp %17 : vector<8x8xf32>
    %c0_10 = arith.constant 0 : index
    %c0_11 = arith.constant 0 : index
    %19 = vector.load %arg7[%c0_10, %c0_11] : memref<8x1xf32, #tpu.memory_space<vmem>>, vector<8x1xf32>
    %20 = arith.mulf %15, %19 : vector<8x1xf32>
    %cst_12 = arith.constant dense<0.000000e+00> : vector<8xf32>
    %21 = vector.multi_reduction <add>, %18, %cst_12 [1] : vector<8x8xf32> to vector<8xf32>
    %22 = vector.shape_cast %21 : vector<8xf32> to vector<8x1xf32>
    %23 = arith.addf %20, %22 : vector<8x1xf32>
    %c0_13 = arith.constant 0 : index
    %c0_14 = arith.constant 0 : index
    %24 = vector.load %arg7[%c0_13, %c0_14] : memref<8x1xf32, #tpu.memory_space<vmem>>, vector<8x1xf32>
    tpu.vector_store %arg7[%c0_13, %c0_14], %23 {strides = array<i32>} : memref<8x1xf32, #tpu.memory_space<vmem>>, vector<8x1xf32>,
    %cst_15 = arith.constant dense<0.000000e+00> : vector<8x32xf32>
    %25 = tpu.matmul %18, %8, %cst_15 {dimension_numbers = #tpu.dot_dimension_numbers<[1], [0], [0], [1], [0, 0, 1, 1], [], []>} : vector<8x8xf32>, vector<8x32xf32>, vector<8x32xf32> -> vector<8x32xf32>
    %c0_16 = arith.constant 0 : index
    %c0_17 = arith.constant 0 : index
    %26 = vector.load %arg8[%c0_16, %c0_17] : memref<8x32xf32, #tpu.memory_space<vmem>>, vector<8x32xf32>
    %27 = vector.broadcast %15 : vector<8x1xf32> to vector<8x32xf32>
    %28 = arith.mulf %27, %26 : vector<8x32xf32>
    %29 = arith.addf %28, %25 : vector<8x32xf32>
    %c0_18 = arith.constant 0 : index
    %c0_19 = arith.constant 0 : index
    %30 = vector.load %arg8[%c0_18, %c0_19] : memref<8x32xf32, #tpu.memory_space<vmem>>, vector<8x32xf32>
    tpu.vector_store %arg8[%c0_18, %c0_19], %29 {strides = array<i32>} : memref<8x32xf32, #tpu.memory_space<vmem>>, vector<8x32xf32>,
    %c0_20 = arith.constant 0 : index
    %c0_21 = arith.constant 0 : index
    %31 = vector.load %arg6[%c0_20, %c0_21] : memref<8x1xf32, #tpu.memory_space<vmem>>, vector<8x1xf32>
    tpu.vector_store %arg6[%c0_20, %c0_21], %13 {strides = array<i32>} : memref<8x1xf32, #tpu.memory_space<vmem>>, vector<8x1xf32>,
    %c0_i32_22 = arith.constant 0 : i32
    %32 = arith.cmpi eq, %arg2, %c0_i32_22 : i32
    %33 = arith.extui %32 : i1 to i32
    %c0_i32_23 = arith.constant 0 : i32
    %34 = arith.cmpi ne, %33, %c0_i32_23 : i32
    scf.if %34 {
      %c0_24 = arith.constant 0 : index
      %c0_25 = arith.constant 0 : index
      %35 = vector.load %arg7[%c0_24, %c0_25] : memref<8x1xf32, #tpu.memory_space<vmem>>, vector<8x1xf32>
      %36 = tpu.reciprocal %35 {approx = true} : vector<8x1xf32> -> vector<8x1xf32>
      %c0_26 = arith.constant 0 : index
      %c0_27 = arith.constant 0 : index
      %37 = vector.load %arg8[%c0_26, %c0_27] : memref<8x32xf32, #tpu.memory_space<vmem>>, vector<8x32xf32>
      %38 = vector.broadcast %36 : vector<8x1xf32> to vector<8x32xf32>
      %39 = arith.mulf %37, %38 : vector<8x32xf32>
      %c0_28 = arith.constant 0 : index
      %c0_29 = arith.constant 0 : index
      %c0_30 = arith.constant 0 : index
      %40 = vector.load %arg5[%c0_28, %c0_29, %c0_30] : memref<1x8x32xf32, #tpu.memory_space<vmem>>, vector<1x8x32xf32>
      %41 = vector.shape_cast %40 : vector<1x8x32xf32> to vector<8x32xf32>
      %42 = vector.shape_cast %39 : vector<8x32xf32> to vector<1x8x32xf32>
      tpu.vector_store %arg5[%c0_28, %c0_29, %c0_30], %42 {strides = array<i32>} : memref<1x8x32xf32, #tpu.memory_space<vmem>>, vector<1x8x32xf32>,
    } else {
    }
    return
  }
  func.func @transform_0(%arg0: i32, %arg1: i32, %arg2: i32) -> (i32, i32, i32) {
    %c0_i32 = arith.constant 0 : i32
    %c0_i32_0 = arith.constant 0 : i32
    return %arg0, %arg1, %c0_i32 : i32, i32, i32
  }
  func.func @transform_1(%arg0: i32, %arg1: i32, %arg2: i32) -> (i32, i32, i32) {
    %c0_i32 = arith.constant 0 : i32
    %c0_i32_0 = arith.constant 0 : i32
    return %arg0, %arg2, %c0_i32 : i32, i32, i32
  }
  func.func @transform_2(%arg0: i32, %arg1: i32, %arg2: i32) -> (i32, i32, i32) {
    %c0_i32 = arith.constant 0 : i32
    %c0_i32_0 = arith.constant 0 : i32
    return %arg0, %arg1, %c0_i32 : i32, i32, i32
  }
}

</mosaic_0001>

<bundles_post_ra>
// kernel: tpu_custom_call.1
= control target key start
LH: loop header
LB: loop body
LE: loop exit
PB: predicated region body
PF: predicated region fallthrough
CT: control target
= control target key end

     0   :  { %7 = vsyncpa [#allocation6], 0  ;;  %s1074_s0 = inlined_call_operand.hbm [shape: f32[2,8,32], index: 0, kind: input, shape index: {}]   ;;  %s1075_s1 = inlined_call_operand.hbm [shape: f32[2,8,32], index: 1, kind: input, shape index: {}]   ;;  %s1076_s2 = inlined_call_operand.hbm [shape: f32[2,8,32], index: 2, kind: output, shape index: {}]  }
   0x1   :  { %9 = vsyncpa [#allocation6 + $0x1], 0 }
   0x2   :  { %10 = vsyncpa [#allocation9], 0 }
   0x3   :  { %12 = vsyncpa [#allocation9 + $0x1], 0 }
   0x4   :  { %13 = vsyncpa [#allocation7], 0 }
   0x5   :  { %15 = vsyncpa [#allocation7 + $0x1], 0  ;;  %s837_s9 = smov 0   ;;  %s839_s10 = smov 0  }
   0x6   :  { %s841_s11 = smov 0   ;;  %s843_s12 = smov 0  }
   0x7   :  { %s845_s13 = smov 0   ;;  %s847_s14 = smov 0  }
   0x8 LB: > { %s555_s15 = sadd.s32 4294967295, %s813_s14   ;;  %s556_s16 = sadd.s32 4294967294, %s813_s14   ;;  %s813_s14 = sphi %s847_s14, %s21_s14   ;;  %s809_s13 = sphi %s845_s13, %s1096_s13   ;;  %s805_s12 = sphi %s843_s12, %s1095_s12   ;;  %s801_s11 = sphi %s841_s11, %s1094_s11   ;;  %s797_s10 = sphi %s839_s10, %s1093_s10   ;;  %s793_s9 = sphi %s837_s9, %s1092_s9  }
   0x9   : > { %s40_s17 = sadd.s32 1, %s809_s13  ;;  %s49_s18 = sadd.s32 1, %s801_s11 }
   0xa   : > { %p42_p0 = scmp.ge.s32.totalorder %s40_s17, 2  ;;  %p56_p1 = scmp.ne.s32.totalorder %s801_s11, %s797_s10 }
   0xb   : > { %p57_p2 = scmp.eq.s32.totalorder %s813_s14, 0  ;;  %p62_p3 = scmp.ne.s32.totalorder %s797_s10, %s793_s9 }
   0xc   : > { %s1098_s17 = smov (%p42_p0, %s40_s17), 0  ;;  %p63_p5 = scmp.eq.s32.totalorder %s555_s15, 0 }
   0xd   : > { %p878_p4 = por %p57_p2, %p56_p1  ;;  %s44_s20 = ssub.s32 %s809_s13, %s1098_s17 }
   0xe   : > { %p116_p6 = scmp.eq.s32.totalorder %s555_s15, 1  ;;  %p47_p7 = scmp.eq.s32.totalorder %s44_s20, 0 }
   0xf   : > { %p884_p8 = por %p63_p5, %p62_p3  ;;  %p122_p10 = scmp.eq.s32.totalorder %s556_s16, 1 }
  0x10   : > { %p888_p9 = por %p116_p6, %p56_p1  ;;  %p605_p13 = scmp.lt.s32.totalorder %s813_s14, 2 }
  0x11   : > { %s1080_s21 = scalar_select %p884_p8, 1, 0 }
  0x12   : > { %s1081_s22 = scalar_select %p888_p9, 1, 0 }
  0x13   : > { %s893_s23 = scalar_select %p47_p7, %s801_s11, %s49_s18  }
  0x14   : > { %p895_p11 = por %p122_p10, %p62_p3  ;;  %s902_s25 = sand.u32 1, %s801_s11  }
  0x15   : > { %s559_s26 = sshll.u32 %s902_s25, 3  ;;  %s560_s27 = sshll.u32 %s809_s13, 7 }
  0x16   : > { %s1082_s24 = scalar_select %p895_p11, 1, 0 }
  0x17   : > { %s911_s30 = scalar_lea.hbm %s1074_s0, %s560_s27  ;;  %s146_s3 = scalar_lea.vmem [#allocation5], %s559_s26 }
  0x18   : > { %s154_s4 = sshll.u32 %s146_s3, 4  ;;  %p919_p0 = pnand %p605_p13, %p878_p4  ;;  %s915_s4 = int_to_ptr.vmem [resolvable:$true] %s154_s4 }
  0x19   : > { %s143_s6 = scalar_lea.sflag [#allocation6], %s902_s25  ;;  %s667_s7 = scalar_lea.hbm %s911_s30, 128 }
  0x1a   : > { %p668_p3 = scmp.ne.s32.totalorder %s911_s30, %s667_s7  ;;  %p669_p5 = pneg %p919_p0 }
  0x1b   : > { %s672_s16 = scalar_lea.hbm %s1074_s0, 256  ;;  %p673_p4 = scmp.lt.u32.totalorder %s911_s30, %s1074_s0 }
  0x1c   : > { %p670_p6 = pnand %p669_p5, %p668_p3  ;;  %p674_p10 = scmp.lt.u32.totalorder %s672_s16, %s667_s7 }
  0x1d   : > { %p676_p12 = scmp.lt.u32.totalorder %s667_s7, %s911_s30 }
  0x1e   : > { %p671_p7 = pneg %p670_p6  ;;  %p675_p13 = por %p674_p10, %p673_p4 }
  0x20   : > { %p677_p1 = por %p676_p12, %p675_p13 }
  0x22   : > { %p678_p2 = pnand %p677_p1, %p671_p7 }
  0x24   : > { %681 = shalt.err (!%p678_p2)
}
  0x25   : > { %s682_s20 = scalar_lea.vmem %s915_s4, 128  ;;  %s815_s28 = smov [#allocation5]  }
  0x26   : > { %p683_p3 = scmp.ne.s32.totalorder %s915_s4, %s682_s20  ;;  %s687_s29 = sshll.u32 %s815_s28, 4  ;;  %s688_s29 = int_to_ptr.vmem [resolvable:$false] %s687_s29 }
  0x27   : > { %s689_s3 = scalar_lea.vmem %s688_s29, 256  ;;  %p690_p9 = scmp.lt.s32.totalorder %s915_s4, %s688_s29 }
  0x28   : > { %p685_p6 = pnand %p683_p3, %p669_p5  ;;  %p691_p4 = scmp.lt.s32.totalorder %s689_s3, %s682_s20 }
  0x2a   : > { %p686_p11 = pneg %p685_p6  ;;  %p692_p10 = por %p691_p4, %p690_p9 }
  0x2c   : > { %p693_p12 = pnand %p692_p10, %p686_p11 }
  0x2e   : > { %696 = shalt.err (!%p693_p12)
}
  0x2f   : > { %597 = dma.hbm_to_vmem [thread:$0]  (!%p919_p0), %s911_s30, 128, %s915_s4, %s143_s6  }
  0x30   : > { %p1084_p1 = scmp.lt.s32.totalorder %s813_s14, 3  ;;  %p1085_p2 = scmp.ge.s32.totalorder %s813_s14, 1 }
  0x31   : > { %s964_s16 = scalar_lea.hbm %s1075_s1, %s560_s27  ;;  %s165_s18 = scalar_lea.vmem [#allocation8], %s559_s26 }
  0x32   : > { %p955_p7 = pnand %p1085_p2, %p1084_p1  ;;  %s173_s19 = sshll.u32 %s165_s18, 4  ;;  %s174_s19 = int_to_ptr.vmem [resolvable:$true] %s173_s19 }
  0x33   : > { %s162_s30 = scalar_lea.sflag [#allocation9], %s902_s25  ;;  %s697_s4 = scalar_lea.hbm %s964_s16, 128 }
  0x34   : > { %s1086_s7 = scalar_select %p955_p7, 1, 0 }
  0x35   : > { %p698_p9 = scmp.ne.s32.totalorder %s964_s16, %s697_s4  ;;  %s702_s27 = scalar_lea.hbm %s1075_s1, 256 }
  0x36   : > { %p703_p3 = scmp.lt.u32.totalorder %s964_s16, %s1075_s1  ;;  %p704_p6 = scmp.lt.u32.totalorder %s702_s27, %s697_s4 }
  0x37   : > { %p700_p11 = pnand %p698_p9, %p669_p5  ;;  %p706_p10 = scmp.lt.u32.totalorder %s697_s4, %s964_s16 }
  0x38   : > { %p705_p4 = por %p704_p6, %p703_p3 }
  0x39   : > { %p701_p13 = pneg %p700_p11 }
  0x3a   : > { %p707_p12 = por %p706_p10, %p705_p4 }
  0x3c   : > { %p708_p1 = pnand %p707_p12, %p701_p13 }
  0x3e   : > { %711 = shalt.err (!%p708_p1)
}
  0x3f   : > { %s712_s25 = scalar_lea.vmem %s174_s19, 128  ;;  %s816_s26 = smov [#allocation8]  }
  0x40   : > { %p713_p2 = scmp.ne.s32.totalorder %s174_s19, %s712_s25  ;;  %s717_s3 = sshll.u32 %s816_s26, 4  ;;  %s718_s3 = int_to_ptr.vmem [resolvable:$false] %s717_s3 }
  0x41   : > { %s719_s8 = scalar_lea.vmem %s718_s3, 256  ;;  %p720_p8 = scmp.lt.s32.totalorder %s174_s19, %s718_s3 }
  0x42   : > { %p715_p9 = pnand %p713_p2, %p669_p5  ;;  %p721_p7 = scmp.lt.s32.totalorder %s719_s8, %s712_s25 }
  0x44   : > { %p716_p11 = pneg %p715_p9  ;;  %p722_p3 = por %p721_p7, %p720_p8 }
  0x46   : > { %p723_p6 = pnand %p722_p3, %p716_p11 }
  0x48   : > { %726 = shalt.err (!%p723_p6)
}
  0x49   : > { %600 = dma.hbm_to_vmem [thread:$0]  (!%p919_p0), %s964_s16, 128, %s174_s19, %s162_s30  }
  0x4a   : > { %p1087_p13 = scmp.ne.s32.totalorder %s1086_s7, 0 }
  0x4b   : > { %s991_s15 = sand.u32 (!%p1087_p13), 1, %s797_s10   ;;  %p1088_p8 = scmp.ne.s32.totalorder (!%p1087_p13), %s1080_s21, 0 }
  0x4c   : > { %182 = sbr.rel (%p1087_p13) target bundleno = 900 (0x384), region = 28  ;;  %s994_s18 = sshll.u32 (!%p1087_p13), %s991_s15, 3 }
  0x4d   : > { %s185_s4 = scalar_lea.sflag (!%p1087_p13), [#allocation6], %s991_s15  ;;  %s188_s6 = scalar_lea.vmem (!%p1087_p13), [#allocation5], %s994_s18 }
  0x53   : > { %780 = dma.done.wait (%p1088_p8), %s185_s4, 128  }
  0x54   : > { %782 = vsyncadd (%p1088_p8), %s185_s4, 4294967168  ;;  %s194_s5 = scalar_lea.sflag [#allocation9], %s991_s15  ;;  %s197_s7 = scalar_lea.vmem [#allocation8], %s994_s18 }
  0x55   : > { %784 = dma.done.wait (%p1088_p8), %s194_s5, 128  }
  0x56   : > { %786 = vsyncadd (%p1088_p8), %s194_s5, 4294967168  ;;  %vm230_vm0 = vcmask 261120   ;;  %v817_v0 = vmov 0.0   ;;  %vm818_vm1 = vmmov 0   ;;  %v234_v1 = vld [vmem:[%s197_s7] sm:$0xff]  ;;  %v232_v2 = vld [vmem:[%s188_s6] sm:$0xff] }
  0x57   : > { %578 = vmatprep.subr.mxu0 %v817_v0  ;;  %231 = vst.msk [vmem:[#allocation4] sm:$0xff] %vm230_vm0, %v817_v0  ;;  %580 = vmatprep.mubr.msk.f32.mxu0 %vm818_vm1, %v817_v0  ;;  %v233_v3 = vmul.f32 0.17677669, %v232_v2  ;;  %vm227_vm2 = vcmask 7168   ;;  %v819_v4 = vmov -inf   ;;  %vm313_vm3 = vcmask 64512  }
  0x58   : > { %583 = vmatprep.subr.mxu1 %v817_v0  ;;  %585 = vmatprep.mubr.msk.f32.mxu1 %vm818_vm1, %v817_v0  ;;  %228 = vst.msk [vmem:[#allocation2] sm:$0xff] %vm227_vm2, %v819_v4  ;;  %229 = vst.msk [vmem:[#allocation3] sm:$0xff] %vm227_vm2, %v817_v0  ;;  %v820_v8 = vmov 0   ;;  %s571_s21 = sshll.u32 %s805_s12, 7  ;;  %s222_s16 = scalar_lea.vmem [#allocation10], %s994_s18 }
  0x59   : > { %579 = vmatpush3.xpose.msk.msra.mxu0 %vm230_vm0, %v234_v1  ;;  %584 = vmatpush3.msra.mxu1 %v234_v1  ;;  %s448_s19 = sshll.u32 %s222_s16, 4  ;;  %s1024_s27 = scalar_lea.hbm %s1076_s2, %s571_s21  ;;  %s1026_s19 = int_to_ptr.vmem [resolvable:$true] %s448_s19 }
  0x5a   : > { %659 = vset.pattern.permute.xlu0 %v820_v8  ;;  %660 = vset.pattern.permute.xlu1 %v820_v8  ;;  %s434_s28 = scalar_lea.sflag [#allocation7], %s991_s15  ;;  %s727_s29 = scalar_lea.vmem %s1026_s19, 128 }
  0x5b   : > { %p728_p0 = scmp.ne.s32.totalorder %s1026_s19, %s727_s29  ;;  %p1089_p5 = scmp.ne.s32.totalorder %s1081_s22, 0 }
  0x5c   : > { %581 = vmatmul.mubr.msk.f32.vlgmr.msra.gmra.mrb[0].mxu0 %vm230_vm0, %v233_v3  ;;  %s821_s12 = smov [#allocation10]  }
  0x5d   : > { %p729_p7 = pnand %p728_p0, %p1089_p5  ;;  %s731_s25 = sshll.u32 %s821_s12, 4  ;;  %s732_s25 = int_to_ptr.vmem [resolvable:$false] %s731_s25 }
  0x5e   : > { %v410_v26 = vld [vmem:[#allocation4] sm:$0xff]  ;;  %s733_s26 = scalar_lea.vmem %s732_s25, 256  ;;  %p734_p10 = scmp.lt.s32.totalorder %s1026_s19, %s732_s25 }
  0x5f   : > { %v312_v9 = vld [vmem:[#allocation2] sm:$0xff]  ;;  %v329_v20 = vld [vmem:[#allocation3] sm:$0xff]  ;;  %p730_p4 = pneg %p729_p7  ;;  %p735_p12 = scmp.lt.s32.totalorder %s733_s26, %s727_s29 }
  0x61   : > { %p736_p1 = por %p735_p12, %p734_p10 }
  0x63   : > { %p737_p2 = pnand %p736_p1, %p730_p4 }
 0x12f   : > { %v308_v5 = vpop.f32.mrb[0].mxu0 }
 0x130   : > { %v582_v6 = vpop.f32.mrb[1].mxu0  ;;  %v314_v7 = vsel %vm313_vm3, %v308_v5, -inf }
 0x131   : > { %315 = vmax.xlane.f32.xlu0 %v314_v7 }
 0x1be   : > { %v316_v10 = vpop.xlane.xlu0 %315 }
 0x1bf   : > { %v317_v11 = vmax.f32 %v312_v9, %v316_v10 }
 0x1c1   : > { %v318_v12 = vsub.f32 %v312_v9, %v317_v11  ;;  %419 = vst.msk [vmem:[#allocation2] sm:$0xff] %vm227_vm2, %v317_v11  ;;  %323 = vperm.xlu0 %659, %v317_v11  }
 0x1c3   : > { %v319_v18 = vmul.f32 1.442695, %v318_v12 }
 0x240   : > { %v324_v13 = vpop.permute.xlu0 %323 }
 0x241   : > { %v326_v14 = vsub.f32 %v308_v5, %v324_v13 }
 0x243   : > { %v327_v15 = vmul.f32 1.442695, %v326_v14 }
 0x245   : > { %661 = vpow2.f32 %v327_v15 }
 0x246   : > { %663 = vpow2.f32 %v319_v18 }
 0x24f   : > { %v662_v16 = vpop.eup %661 }
 0x250   : > { %586 = vmatmul.mubr.msk.f32.vlgmr.msra.gmra.mrb[0].mxu1 %vm313_vm3, %v662_v16  ;;  %v331_v17 = vsel %vm313_vm3, %v662_v16, 0.0  ;;  %v664_v19 = vpop.eup %663 }
 0x251   : > { %332 = vadd.xlane.f32.xlu1 %v331_v17  ;;  %v330_v21 = vmul.f32 %v664_v19, %v329_v20 }
 0x262   : > { %413 = vperm.xlu1 %660, %v664_v19  }
 0x2de   : > { %v333_v22 = vpop.xlane.xlu1 %332 }
 0x2df   : > { %v334_v23 = vadd.f32 %v333_v22, %v330_v21 }
 0x2e1   : > { %336 = vst.msk [vmem:[#allocation3] sm:$0xff] %vm227_vm2, %v334_v23 }
 0x2e2   : > { %v414_v27 = vpop.permute.xlu1 %413 }
 0x2e3   : > { %v416_v28 = vmul.f32 %v414_v27, %v410_v26 }
 0x2e8   : > { %v423_v24 = vld [vmem:[#allocation3] sm:$0xff] }
 0x2e9   : > { %665 = vrcp.f32 %v423_v24 }
 0x2f3   : > { %v666_v25 = vpop.eup %665 }
 0x2f4   : > { %428 = vperm.xlu1 %660, %v666_v25  }
 0x323   : > { %v406_v29 = vpop.f32.mrb[0].mxu1 }
 0x324   : > { %v417_v30 = vadd.f32 %v416_v28, %v406_v29  ;;  %v587_v31 = vpop.f32.mrb[1].mxu1 }
 0x326   : > { %418 = vst.msk [vmem:[#allocation4] sm:$0xff] %vm230_vm0, %v417_v30 }
 0x32d   : > { %v425_v32 = vld [vmem:[#allocation4] sm:$0xff] }
 0x373   : > { %v429_v33 = vpop.permute.xlu1 %428 }
 0x374   : > { %v431_v34 = vmul.f32 %v429_v33, %v425_v32 }
 0x376   : > { %432 = vst.msk [vmem:[%s222_s16] sm:$0xff] %vm230_vm0, %v431_v34 }
 0x377   : > { %740 = shalt.err (!%p737_p2)
}
 0x378   : > { %s741_s3 = scalar_lea.hbm %s1024_s27, 128  ;;  %s745_s18 = scalar_lea.hbm %s1076_s2, 256 }
 0x379   : > { %p742_p9 = scmp.ne.s32.totalorder %s1024_s27, %s741_s3  ;;  %p746_p6 = scmp.lt.u32.totalorder %s1024_s27, %s1076_s2 }
 0x37a   : > { %p747_p13 = scmp.lt.u32.totalorder %s745_s18, %s741_s3  ;;  %p749_p0 = scmp.lt.u32.totalorder %s741_s3, %s1024_s27 }
 0x37b   : > { %p743_p11 = pnand %p742_p9, %p1089_p5 }
 0x37c   : > { %p748_p8 = por %p747_p13, %p746_p6 }
 0x37d   : > { %p744_p3 = pneg %p743_p11 }
 0x37e   : > { %p750_p7 = por %p749_p0, %p748_p8 }
 0x380   : > { %p751_p4 = pnand %p750_p7, %p744_p3 }
 0x382   : > { %754 = shalt.err (!%p751_p4)
}
 0x383   : > { %592 = dma.vmem_to_hbm [thread:$0]  (%p1089_p5), %s1026_s19, 128, %s1024_s27, %s434_s28  }
 0x384 PF: > { %s460_s5 = sand.u32 1, %s793_s9   ;;  %p1090_p10 = scmp.ne.s32.totalorder %s1082_s24, 0 }
 0x385   : > { %p1091_p12 = scmp.ge.s32.totalorder %s813_s14, 2  ;;  %s461_s7 = scalar_lea.sflag [#allocation7], %s460_s5 }
 0x387   : > { %p602_p1 = pnand %p1091_p12, %p1090_p10 }
 0x389   : > { %788 = dma.done.wait (!%p602_p1), %s461_s7, 128  }
 0x38a   : > { %790 = vsyncadd (!%p602_p1), %s461_s7, 4294967168  ;;  %s21_s14 = sadd.s32 1, %s813_s14   ;;  %s1092_s9 = smov %s797_s10 }
 0x38b   : > { %p18_p2 = scmp.ge.s32.totalorder %s21_s14, 4   ;;  %s1093_s10 = smov %s801_s11 }
 0x38c   : > { %s1094_s11 = smov %s893_s23  ;;  %s1095_s12 = smov %s809_s13 }
 0x38d   : > { %s1096_s13 = smov %s1098_s17  ;;  %20 = sbr.rel (!%p18_p2) target bundleno = 8 (0x8), region = 94 }
 0x394   :  { %466 = vsyncpa [#allocation6], 1 }
 0x395   :  { %468 = vsyncpa [#allocation6 + $0x1], 1 }
 0x396   :  { %469 = vsyncpa [#allocation9], 1 }
 0x397   :  { %471 = vsyncpa [#allocation9 + $0x1], 1 }
 0x398   :  { %472 = vsyncpa [#allocation7], 1 }
 0x399   :  { %474 = vsyncpa [#allocation7 + $0x1], 1 }

</bundles_post_ra>
